<compile_context>
chip_gen: v7x
topology: tpu7x:2x2x1
jax: 0.10.0
libtpu: 0.0.40
codegen_flags: <defaults>
</compile_context>

<pallas_src>
import jax
import jax.numpy as jnp
from jax.experimental import pallas as pl
from jax.experimental.pallas import tpu as pltpu


# ----------------------------- Pallas kernel --------------------------------
def _proj_kernel(x_ref, w_ref, b_ref, o_ref):
    # x_ref: (1, K, TL) bf16 patches (K-major) for one image / one L-tile
    # w_ref: (E, K)     bf16 projection weight (resident)
    # b_ref: (E, 1)     f32 bias (resident)
    # o_ref: (1, E, TL) f32 output block (lane axis = TL -> lane-dense stores)
    acc = jnp.dot(w_ref[...], x_ref[0], preferred_element_type=jnp.float32)  # (E, TL)
    o_ref[0] = (acc + b_ref[...]).astype(o_ref.dtype)


def _patch_proj(patches_t, weight_t, bias, out_dtype=jnp.float32):
    """patches_t: (N, K, L); weight_t: (E, K); bias: (E,)  ->  (N, E, L)."""
    N, K, L = patches_t.shape
    E = weight_t.shape[0]

    # Lane tile on the patch axis: 512 (multiple of 128) when L is large enough,
    # otherwise the full (small) extent, which is always a legal block shape.
    TL = 512 if L >= 512 else L
    grid = (N, pl.cdiv(L, TL))

    bias2d = bias.reshape(E, 1).astype(jnp.float32)

    bytes_accessed = (
        patches_t.size * patches_t.dtype.itemsize
        + weight_t.size * weight_t.dtype.itemsize
        + bias2d.size * bias2d.dtype.itemsize
        + N * E * L * jnp.dtype(out_dtype).itemsize
    )
    cost = pl.CostEstimate(
        flops=2 * N * L * K * E,
        transcendentals=0,
        bytes_accessed=bytes_accessed,
    )

    return pl.pallas_call(
        _proj_kernel,
        out_shape=jax.ShapeDtypeStruct((N, E, L), out_dtype),
        grid=grid,
        in_specs=[
            pl.BlockSpec((1, K, TL), lambda n, l: (n, 0, l)),   # patches tile
            pl.BlockSpec((E, K), lambda n, l: (0, 0)),          # weight resident
            pl.BlockSpec((E, 1), lambda n, l: (0, 0)),          # bias resident
        ],
        out_specs=pl.BlockSpec((1, E, TL), lambda n, l: (n, 0, l)),
        compiler_params=pltpu.CompilerParams(
            dimension_semantics=("parallel", "parallel"),
        ),
        cost_estimate=cost,
    )(patches_t, weight_t, bias2d)


# ----------------------------- Module wrapper --------------------------------
class PatchEmbed:
    """Image to Patch Embedding (norm_layer=None path)."""

    def __init__(self, patch_size=4, in_chans=3, embed_dim=96, key=None,
                 compute_dtype=jnp.bfloat16):
        self.patch_size = (patch_size, patch_size)
        self.in_chans = in_chans
        self.embed_dim = embed_dim
        self.compute_dtype = compute_dtype
        if key is None:
            key = jax.random.PRNGKey(0)
        kw, kb = jax.random.split(key)
        # Conv2d weight: (embed_dim, in_chans, p, p); deterministic synthetic init
        # mimicking PyTorch's uniform(-1/sqrt(fan_in), 1/sqrt(fan_in)).
        fan_in = in_chans * patch_size * patch_size
        bound = 1.0 / (fan_in ** 0.5)
        self.weight = jax.random.uniform(
            kw, (embed_dim, in_chans, patch_size, patch_size),
            dtype=jnp.float32, minval=-bound, maxval=bound)
        self.bias = jax.random.uniform(
            kb, (embed_dim,), dtype=jnp.float32, minval=-bound, maxval=bound)
        # TODO(synk): norm_layer (LayerNorm) branch not implemented (default is None).

    def __call__(self, x):
        # x: (N, C, H, W) float32  (NCHW, matching PyTorch)
        N, C, H, W = x.shape
        ph, pw = self.patch_size
        # Right/bottom zero padding to a multiple of patch_size (F.pad semantics).
        pad_w = (pw - W % pw) % pw
        pad_h = (ph - H % ph) % ph
        if pad_w or pad_h:
            x = jnp.pad(x, ((0, 0), (0, 0), (0, pad_h), (0, pad_w)))
        Hp = (H + pad_h) // ph
        Wp = (W + pad_w) // pw
        L = Hp * Wp
        K = C * ph * pw

        # Cast to the bf16 compute dtype *before* the layout shuffle so the
        # wrapper-side patch-extraction transpose moves half the bytes.
        xc = x.astype(self.compute_dtype)
        # (N,C,Hp,ph,Wp,pw) -> (N,C,ph,pw,Hp,Wp) -> (N, K, L): K-major patch
        # matrix so the kernel writes lane-dense (E, TL) blocks and the
        # (N, E, L) result reshapes straight to NCHW (no output transpose).
        # TODO(synk): fuse the patch extraction itself into the kernel (needs an
        # in-VMEM (C,ph,Wp,pw)->(K,Wp) shuffle); it is the remaining extra HBM
        # round trip of the activation.
        xt = xc.reshape(N, C, Hp, ph, Wp, pw)
        xt = jnp.transpose(xt, (0, 1, 3, 5, 2, 4)).reshape(N, K, L)

        # Conv weight (E, C, ph, pw) -> (E, K), same (C, ph, pw) K ordering.
        wt = self.weight.reshape(self.embed_dim, K).astype(self.compute_dtype)

        out = _patch_proj(xt, wt, self.bias, out_dtype=jnp.float32)  # (N, E, L)
        return out.reshape(N, self.embed_dim, Hp, Wp)                # NCHW


# ----------------------------- Reference check --------------------------------
def _reference(x, weight, bias, patch_size):
    # Pure-JAX conv reference (stride = kernel = patch_size, NCHW).
    out = jax.lax.conv_general_dilated(
        x, weight,
        window_strides=(patch_size, patch_size),
        padding="VALID",
        dimension_numbers=("NCHW", "OIHW", "NCHW"))
    return out + bias.reshape(1, -1, 1, 1)


if __name__ == "__main__":
    key = jax.random.PRNGKey(0)
    k_x, k_p = jax.random.split(key)

    # Small shapes: batch=2, in_chans=4, H=W=16, patch=4, embed_dim=32
    N, C, H, W = 2, 4, 16, 16
    patch = 4
    embed_dim = 32

    x = jax.random.normal(k_x, (N, C, H, W), dtype=jnp.float32)

    mod = PatchEmbed(patch_size=patch, in_chans=C, embed_dim=embed_dim, key=k_p)
    fwd = jax.jit(lambda inp: mod(inp))
    out = jax.block_until_ready(fwd(x))
    assert out.shape == (N, embed_dim, H // patch, W // patch), out.shape

    # 1) Loose check against the exact f32 conv reference (bf16 compute dtype).
    ref = jax.block_until_ready(_reference(x, mod.weight, mod.bias, patch))
    assert jnp.allclose(out, ref, atol=2e-2, rtol=2e-2), float(
        jnp.max(jnp.abs(out - ref)))

    # 2) Tight check against a reference built from the same bf16-rounded operands.
    xq = x.astype(jnp.bfloat16).astype(jnp.float32)
    wq = mod.weight.astype(jnp.bfloat16).astype(jnp.float32)
    refq = jax.block_until_ready(_reference(xq, wq, mod.bias, patch))
    assert jnp.allclose(out, refq, atol=1e-3, rtol=1e-3), float(
        jnp.max(jnp.abs(out - refq)))

    print("KERNEL_OK")
</pallas_src>

<mosaic_0001>
module attributes {stable_mosaic.version = 11 : i64} {
  func.func @_proj_kernel(%arg0: i32, %arg1: i32, %arg2: memref<1x64x16xbf16, #tpu.memory_space<vmem>>, %arg3: memref<32x64xbf16, #tpu.memory_space<vmem>>, %arg4: memref<32x1xf32, #tpu.memory_space<vmem>>, %arg5: memref<1x32x16xf32, #tpu.memory_space<vmem>>) attributes {dimension_semantics = [#tpu.dimension_semantics<parallel>, #tpu.dimension_semantics<parallel>], iteration_bounds = array<i64: 2, 1>, scalar_prefetch = 0 : i64, scratch_operands = 0 : i64, tpu.core_type = #tpu.core_type<tc>, window_params = [{transform_indices = @transform_0, window_bounds = array<i64: 1, 64, 16>}, {pipeline_mode = #tpu.pipeline_mode<synchronous>, transform_indices = @transform_1, window_bounds = array<i64: 32, 64>}, {pipeline_mode = #tpu.pipeline_mode<synchronous>, transform_indices = @transform_2, window_bounds = array<i64: 32, 1>}, {transform_indices = @transform_3, window_bounds = array<i64: 1, 32, 16>}]} {
    %c0 = arith.constant 0 : index
    %c0_0 = arith.constant 0 : index
    %0 = vector.load %arg3[%c0, %c0_0] : memref<32x64xbf16, #tpu.memory_space<vmem>>, vector<32x64xbf16>
    %c0_1 = arith.constant 0 : index
    %c0_2 = arith.constant 0 : index
    %c0_3 = arith.constant 0 : index
    %1 = vector.load %arg2[%c0_1, %c0_2, %c0_3] : memref<1x64x16xbf16, #tpu.memory_space<vmem>>, vector<1x64x16xbf16>
    %2 = vector.shape_cast %1 : vector<1x64x16xbf16> to vector<64x16xbf16>
    %cst = arith.constant dense<0.000000e+00> : vector<32x16xf32>
    %3 = tpu.matmul %0, %2, %cst {dimension_numbers = #tpu.dot_dimension_numbers<[1], [0], [0], [1], [0, 0, 1, 1], [], []>} : vector<32x64xbf16>, vector<64x16xbf16>, vector<32x16xf32> -> vector<32x16xf32>
    %c0_4 = arith.constant 0 : index
    %c0_5 = arith.constant 0 : index
    %4 = vector.load %arg4[%c0_4, %c0_5] : memref<32x1xf32, #tpu.memory_space<vmem>>, vector<32x1xf32>
    %5 = vector.broadcast %4 : vector<32x1xf32> to vector<32x16xf32>
    %6 = arith.addf %3, %5 : vector<32x16xf32>
    %c0_6 = arith.constant 0 : index
    %c0_7 = arith.constant 0 : index
    %c0_8 = arith.constant 0 : index
    %7 = vector.load %arg5[%c0_6, %c0_7, %c0_8] : memref<1x32x16xf32, #tpu.memory_space<vmem>>, vector<1x32x16xf32>
    %8 = vector.shape_cast %7 : vector<1x32x16xf32> to vector<32x16xf32>
    %9 = vector.shape_cast %6 : vector<32x16xf32> to vector<1x32x16xf32>
    tpu.vector_store %arg5[%c0_6, %c0_7, %c0_8], %9 {strides = array<i32>} : memref<1x32x16xf32, #tpu.memory_space<vmem>>, vector<1x32x16xf32>,
    return
  }
  func.func @transform_0(%arg0: i32, %arg1: i32) -> (i32, i32, i32) {
    %c0_i32 = arith.constant 0 : i32
    %c0_i32_0 = arith.constant 0 : i32
    return %arg0, %c0_i32, %arg1 : i32, i32, i32
  }
  func.func @transform_1(%arg0: i32, %arg1: i32) -> (i32, i32) {
    %c0_i32 = arith.constant 0 : i32
    %c0_i32_0 = arith.constant 0 : i32
    %c0_i32_1 = arith.constant 0 : i32
    return %c0_i32, %c0_i32_0 : i32, i32
  }
  func.func @transform_2(%arg0: i32, %arg1: i32) -> (i32, i32) {
    %c0_i32 = arith.constant 0 : i32
    %c0_i32_0 = arith.constant 0 : i32
    %c0_i32_1 = arith.constant 0 : i32
    return %c0_i32, %c0_i32_0 : i32, i32
  }
  func.func @transform_3(%arg0: i32, %arg1: i32) -> (i32, i32, i32) {
    %c0_i32 = arith.constant 0 : i32
    %c0_i32_0 = arith.constant 0 : i32
    return %arg0, %c0_i32, %arg1 : i32, i32, i32
  }
}

</mosaic_0001>

<bundles_post_ra>
// kernel: _lambda_.1
= control target key start
LH: loop header
LB: loop body
LE: loop exit
PB: predicated region body
PF: predicated region fallthrough
CT: control target
= control target key end

     0   :  { %s534_s12 = smov 0   ;;  %s536_s13 = smov 0   ;;  %s590_s0 = inlined_call_operand.vmem [shape: bf16[2,64,16], index: 0, kind: input, shape index: {}]   ;;  %s591_s1 = inlined_call_operand.vmem [shape: bf16[32,64], index: 1, kind: input, shape index: {}]   ;;  %s592_s2 = inlined_call_operand.vmem [shape: f32[32,1], index: 2, kind: input, shape index: {}]   ;;  %s593_s3 = inlined_call_operand.vmem [shape: f32[2,32,16], index: 3, kind: output, shape index: {}]  }
   0x1   :  { %s538_s14 = smov 0  }
   0x2 LB: > { %s25_s15 = sadd.s32 1, %s507_s13  ;;  %p421_p0 = scmp.ge.s32.totalorder %s511_s14, 1  ;;  %s511_s14 = sphi %s538_s14, %s13_s14   ;;  %s507_s13 = sphi %s536_s13, %s595_s13   ;;  %s503_s12 = sphi %s534_s12, %s594_s12  }
   0x3   : > { %p27_p1 = scmp.ge.s32.totalorder %s25_s15, 2  ;;  %p156_p2 = scmp.lt.s32.totalorder %s511_s14, 3 }
   0x5   : > { %s597_s15 = smov (%p27_p1, %s25_s15), 0  ;;  %p157_p3 = pnand %p421_p0, %p156_p2 }
   0x6   : > { %p186_p4 = scmp.lt.s32.totalorder (!%p157_p3), %s503_s12, 1  ;;  %v487_v0 = vld [vmem:[%s591_s1] sm:$0xff] (!%p157_p3)   ;;  %vm273_vm0 = vcmask (!%p157_p3), 523264   ;;  %v217_v1 = vld [vmem:[%s592_s2 + $0x10] sm:$0xff] (!%p157_p3)  ;;  %v513_v3 = vmov (!%p157_p3), 0   ;;  %v218_v4 = vld [vmem:[%s592_s2 + $0x18] sm:$0xff] (!%p157_p3) }
   0x7   : > { %160 = sbr.rel (%p157_p3) target bundleno = 252 (0xfc), region = 32  ;;  %452 = vmatprep.mubr.msk.bf16.mxu0 (!%p157_p3), %vm273_vm0, %v487_v0  ;;  %v215_v2 = vld [vmem:[%s592_s2] sm:$0xff] (!%p157_p3)  ;;  %482 = vset.pattern.permute.xlu1 (!%p157_p3), %v513_v3  ;;  %v216_v5 = vld [vmem:[%s592_s2 + $0x8] sm:$0xff] (!%p157_p3)  ;;  %vm329_vm1 = vcmask (!%p157_p3), 130048  }
   0x8   : > { %481 = vset.pattern.permute.xlu0 (!%p157_p3), %v513_v3  ;;  %231 = vperm.xlu1 (!%p157_p3), %482, %v217_v1   ;;  %v488_v10 = vld [vmem:[%s591_s1 + $0x8] sm:$0xff] (!%p157_p3)  }
   0x9   : > { %221 = vperm.xlu0 (!%p157_p3), %481, %v215_v2  }
   0xc   : > { %236 = vperm.xlu1 (!%p157_p3), %482, %v218_v4  }
   0xd   : > { %226 = vperm.xlu0 (!%p157_p3), %481, %v216_v5  }
   0xe   : > { %s599_s12 = smov (!%p186_p4, %s503_s12), 1 }
   0xf   : > { %s436_s22 = sshll.u32 %s599_s12, 5 }
  0x10   : > { %s193_s25 = scalar_lea.vmem %s590_s0, %s436_s22  ;;  %s201_s7 = scalar_lea.vmem %s593_s3, %s436_s22 }
  0x11   : > { %v483_v6 = vld [vmem:[%s193_s25] sm:$0xff]   ;;  %v484_v7 = vld [vmem:[%s193_s25 + $0x8] sm:$0xff]   ;;  %v485_v8 = vld [vmem:[%s193_s25 + $0x10] sm:$0xff]  }
  0x12   : > { %444 = vmatprep.subr.bf16.mxu0 %v483_v6  ;;  %v486_v9 = vld [vmem:[%s193_s25 + $0x18] sm:$0xff]  }
  0x13   : > { %445 = vmatpush3.bf16.msra.mxu0 %v483_v6 }
  0x14   : > { %446 = vmatprep.subr.bf16.mxu0 %v484_v7 }
  0x17   : > { %447 = vmatpush3.bf16.msra.mxu0 %v484_v7 }
  0x18   : > { %448 = vmatprep.subr.bf16.mxu0 %v485_v8 }
  0x1b   : > { %449 = vmatpush3.bf16.msra.mxu0 %v485_v8 }
  0x1c   : > { %450 = vmatprep.subr.bf16.mxu0 %v486_v9 }
  0x1f   : > { %451 = vmatpush3.bf16.msra.mxu0 %v486_v9 }
  0x22   : > { %453 = vmatmul.mubr.msk.bf16.vlgmr.msra.gmra.mrb[0].mxu0 %vm273_vm0, %v488_v10 }
  0x87   : > { %v232_v11 = vpop.permute.xlu1 %231 }
  0x88   : > { %v222_v12 = vpop.permute.xlu0 %221 }
  0x8b   : > { %v237_v16 = vpop.permute.xlu1 %236 }
  0x8c   : > { %v227_v19 = vpop.permute.xlu0 %226 }
  0xf5   : > { %v454_v13 = vpop.f32.mrb[0].mxu0 }
  0xf6   : > { %v323_v14 = vadd.f32 %v454_v13, %v232_v11  ;;  %v314_v15 = vpop.f32.mrb[1].mxu0 }
  0xf7   : > { %v315_v17 = vadd.f32 %v314_v15, %v222_v12  ;;  %v455_v18 = vpop.f32.mrb[2].mxu0 }
  0xf8   : > { %332 = vst.msk [vmem:[%s201_s7 + $0x10] sm:$0xff] %vm329_vm1, %v323_v14  ;;  %v326_v20 = vadd.f32 %v455_v18, %v237_v16  ;;  %v317_v21 = vpop.f32.mrb[3].mxu0 }
  0xf9   : > { %330 = vst.msk [vmem:[%s201_s7] sm:$0xff] %vm329_vm1, %v315_v17  ;;  %v318_v22 = vadd.f32 %v317_v21, %v227_v19 }
  0xfa   : > { %333 = vst.msk [vmem:[%s201_s7 + $0x18] sm:$0xff] %vm329_vm1, %v326_v20 }
  0xfb   : > { %331 = vst.msk [vmem:[%s201_s7 + $0x8] sm:$0xff] %vm329_vm1, %v318_v22 }
  0xfc PF: > { %s13_s14 = sadd.s32 1, %s511_s14   ;;  %s594_s12 = smov %s507_s13 }
  0xfd   : > { %p10_p5 = scmp.ge.s32.totalorder %s13_s14, 4   ;;  %s595_s13 = smov %s597_s15 }
  0xff   :  { %12 = sbr.rel (!%p10_p5) target bundleno = 2 (0x2), region = 62 }

</bundles_post_ra>
